<compile_context>
chip_gen: v7x
topology: tpu7x:2x2x1
jax: 0.10.0
libtpu: 0.0.40
codegen_flags: <defaults>
</compile_context>

<pallas_src>
import jax
import jax.numpy as jnp
from jax.experimental import pallas as pl
from jax.experimental.pallas import tpu as pltpu

SIGMA_DATA = 0.5                      # EDMScaling(sigma_data=0.5)

_TARGET_TILE_BYTES = 2 * 1024 * 1024  # ~2 MiB of x per grid step (per direction)
_MIN_HW_TILE = 512                    # lane-dense floor (85%+ of HBM roofline)
_MIN_GRID_STEPS = 4                   # >= 2 pipelined steps per v7x TensorCore
_VMEM_CAP_BYTES = 24 * 1024 * 1024    # double-buffered in+out+temps, << 32 MiB scoped
_MXU_MIN_C = 64                       # below this, the MXU is wasted -> VPU FMAs


def _choose_hw_tile(hw_pad: int, c: int, itemsize: int, batch: int) -> int:
    """Pick the HW (lane) tile from a byte budget, not a fixed lane count."""
    per_lane_bytes = c * max(itemsize, 4)          # f32 compute temps dominate small dtypes
    tile = _TARGET_TILE_BYTES // per_lane_bytes
    tile = min(hw_pad, max(_MIN_HW_TILE, tile))
    tile = max(128, (tile // 128) * 128)
    tile = min(tile, hw_pad)

    # Keep enough total grid steps that BlockSpec double-buffering can overlap DMA
    # with compute and both v7x TensorCores get work.
    min_hw_steps = max(1, -(-_MIN_GRID_STEPS // batch))     # ceil(_MIN_GRID_STEPS / batch)
    if pl.cdiv(hw_pad, tile) < min_hw_steps:
        tile = max(128, (pl.cdiv(hw_pad, min_hw_steps) // 128) * 128)

    # Cap the double-buffered working set (in + out, + f32 temps) well under the
    # v7x 32 MiB scoped VMEM limit.  (On v5e ~1 MiB/step already saturates HBM.)
    def working_set(t):
        return (4 * itemsize + 12) * c * t
    while working_set(tile) > _VMEM_CAP_BYTES and tile > 128:
        tile = max(128, ((tile // 2) // 128) * 128)

    # Prefer a tile that divides hw_pad exactly: every block full and lane-dense,
    # no masked tail stores.  Only accept if it doesn't shrink the tile > 2x.
    units = hw_pad // 128
    for d in range(tile // 128, 0, -1):
        if units % d == 0:
            if d * 128 * 2 >= tile:
                tile = d * 128
            break
    return tile


def _denoiser_kernel(coef_ref, x_ref, wt_ref, b_ref, o_ref):
    """One grid step = one (batch, HW-tile) block.

    coef_ref : SMEM f32[B, 3]          [c_in*c_out, c_noise*c_out, c_skip] per batch
    x_ref    : VMEM  [C, HW_TILE]      (batch dim squeezed by BlockSpec), io dtype
    wt_ref   : VMEM f32[C, C]          surrogate 1x1-conv weight, pre-transposed
    b_ref    : VMEM f32[C, 1]          surrogate bias
    o_ref    : VMEM  [C, HW_TILE]      io dtype
    """
    b = pl.program_id(0)
    c_inout = coef_ref[b, 0]           # c_in * c_out   (dot is linear -> fold c_in)
    c_bias = coef_ref[b, 1]            # c_noise * c_out
    c_skip = coef_ref[b, 2]

    # Cast to f32 immediately after load (v5e has no bf16 VPU); HW stays on lanes.
    x = x_ref[...].astype(jnp.float32)                      # (C, HW_TILE)
    w_t = wt_ref[...]                                       # (C, C) f32
    C = x.shape[0]

    if C >= _MXU_MIN_C:
        net = jnp.dot(w_t, x, preferred_element_type=jnp.float32)
    else:
        # Small-C path: a KxK matmul with K=4..32 wastes the 128/256-wide MXU and
        # adds push/pop latency; the VPU has huge slack on a mem-bound kernel.
        net = w_t[:, 0:1] * x[0:1, :]
        for c in range(1, C):
            net = net + w_t[:, c:c + 1] * x[c:c + 1, :]

    out = net * c_inout + b_ref[...] * c_bias + x * c_skip
    o_ref[...] = out.astype(o_ref.dtype)


def denoiser_forward(x_nchw, sigma, w, bias):
    """x_nchw: [B, C, H, W] (f32 or bf16), sigma: f32[B], w: f32[C, C], bias: f32[1, C].

    Surrogate network: net[b, d, h, w] = sum_c (x*c_in)[b, c, h, w] * w[c, d]
                                         + c_noise[b] * bias[d]
    Output dtype == input dtype; all math runs in f32 inside the kernel.
    """
    B, C, H, W = x_nchw.shape
    HW = H * W
    io_dtype = x_nchw.dtype
    itemsize = jnp.dtype(io_dtype).itemsize

    # EDM scaling coefficients, once per batch element in the wrapper (trivial XLA
    # ops) instead of rsqrt/log/div on every grid step inside the kernel.
    sig = sigma.astype(jnp.float32)
    sd2 = jnp.float32(SIGMA_DATA * SIGMA_DATA)
    denom = sig * sig + sd2
    r = jax.lax.rsqrt(denom)
    c_skip = sd2 * r * r
    c_out = sig * jnp.float32(SIGMA_DATA) * r
    c_in = r
    c_noise = jnp.float32(0.25) * jnp.log(sig)   # matches reference; -inf if sigma == 0
    coeffs = jnp.stack([c_in * c_out, c_noise * c_out, c_skip], axis=1)   # f32[B, 3]

    # Pure reshape (no transpose): channels stay on sublanes, HW becomes lanes.
    x_bchw = x_nchw.reshape(B, C, HW)
    hw_pad = ((HW + 127) // 128) * 128
    if hw_pad != HW:
        # Pad once in the wrapper so every store inside the kernel is an unmasked,
        # lane-dense vst (masked vst.msk per row costs store-slot throughput).
        x_bchw = jnp.pad(x_bchw, ((0, 0), (0, 0), (0, hw_pad - HW)))

    w_t = jnp.transpose(w).astype(jnp.float32)   # (C, C): tiny, net = dot(w^T, x)
    bias_c1 = bias.reshape(C, 1).astype(jnp.float32)

    hw_tile = _choose_hw_tile(hw_pad, C, itemsize, B)
    n_hw = pl.cdiv(hw_pad, hw_tile)

    cost = pl.CostEstimate(
        flops=2 * B * C * C * hw_pad + 6 * B * C * hw_pad,
        transcendentals=0,
        bytes_accessed=B * C * hw_pad * 2 * itemsize + C * C * 4 + C * 4 + B * 3 * 4,
    )

    out = pl.pallas_call(
        _denoiser_kernel,
        out_shape=jax.ShapeDtypeStruct((B, C, hw_pad), io_dtype),
        grid_spec=pltpu.PrefetchScalarGridSpec(
            num_scalar_prefetch=0,
            grid=(B, n_hw),
            in_specs=[
                pl.BlockSpec(memory_space=pltpu.MemorySpace.SMEM),          # coeffs [B,3]
                pl.BlockSpec((None, C, hw_tile), lambda b, t: (b, 0, t)),   # x
                pl.BlockSpec((C, C), lambda b, t: (0, 0)),                  # w^T
                pl.BlockSpec((C, 1), lambda b, t: (0, 0)),                  # bias
            ],
            out_specs=pl.BlockSpec((None, C, hw_tile), lambda b, t: (b, 0, t)),
        ),
        compiler_params=pltpu.CompilerParams(
            dimension_semantics=("parallel", "parallel"),
            vmem_limit_bytes=32 * 1024 * 1024,   # working set capped at ~24 MiB above
        ),
        cost_estimate=cost,
    )(coeffs, x_bchw, w_t, bias_c1)

    if hw_pad != HW:
        out = out[:, :, :HW]
    return out.reshape(B, C, H, W)


def _reference(x_nchw, sigma, w, bias):
    """Pure-JAX f32 reference of the same forward pass (NCHW, append_dims broadcasting)."""
    B = x_nchw.shape[0]
    x = x_nchw.astype(jnp.float32)
    sig = sigma.reshape(B, 1, 1, 1)                      # append_dims(sigma, input.ndim)
    sd2 = SIGMA_DATA * SIGMA_DATA
    denom = sig * sig + sd2
    c_skip = sd2 / denom
    c_out = sig * SIGMA_DATA / jnp.sqrt(denom)
    c_in = 1.0 / jnp.sqrt(denom)
    c_noise = 0.25 * jnp.log(sigma).reshape(B, 1, 1, 1)

    x_scaled = x * c_in
    net = jnp.einsum("bchw,cd->bdhw", x_scaled, w)
    net = net + c_noise * bias.reshape(1, -1, 1, 1)
    return net * c_out + x * c_skip


if __name__ == "__main__":
    key = jax.random.PRNGKey(0)
    k_x, k_s, k_w, k_b = jax.random.split(key, 4)

    B, C, H, W = 2, 4, 16, 16
    x = jax.random.normal(k_x, (B, C, H, W), dtype=jnp.float32)
    sigma = jnp.exp(jax.random.normal(k_s, (B,), dtype=jnp.float32))  # positive noise levels
    w = jax.random.normal(k_w, (C, C), dtype=jnp.float32) * 0.1
    bias = jax.random.normal(k_b, (1, C), dtype=jnp.float32) * 0.1

    ref = _reference(x, sigma, w, bias)

    # f32 I/O: exact check against the reference.
    out = jax.block_until_ready(denoiser_forward(x, sigma, w, bias))
    assert out.shape == (B, C, H, W)
    assert out.dtype == jnp.float32
    assert jnp.allclose(out, ref, atol=1e-5, rtol=1e-5), "f32 mismatch vs reference"

    # bf16 I/O: halves HBM traffic on this bandwidth-bound kernel; math stays f32
    # inside the kernel, so only input/output quantization error remains.
    out_bf16 = jax.block_until_ready(
        denoiser_forward(x.astype(jnp.bfloat16), sigma, w, bias))
    assert out_bf16.shape == (B, C, H, W)
    assert out_bf16.dtype == jnp.bfloat16
    assert jnp.allclose(out_bf16.astype(jnp.float32), ref, atol=7e-2, rtol=7e-2), \
        "bf16 mismatch vs reference"

    print("KERNEL_OK")
</pallas_src>

<mosaic_0001>
module attributes {stable_mosaic.version = 11 : i64} {
  func.func @_denoiser_kernel(%arg0: i32, %arg1: i32, %arg2: memref<2x3xf32, #tpu.memory_space<smem>>, %arg3: memref<1x4x128xf32, #tpu.memory_space<vmem>>, %arg4: memref<4x4xf32, #tpu.memory_space<vmem>>, %arg5: memref<4x1xf32, #tpu.memory_space<vmem>>, %arg6: memref<1x4x128xf32, #tpu.memory_space<vmem>>) attributes {dimension_semantics = [#tpu.dimension_semantics<parallel>, #tpu.dimension_semantics<parallel>], iteration_bounds = array<i64: 2, 2>, scalar_prefetch = 0 : i64, scratch_operands = 0 : i64, tpu.core_type = #tpu.core_type<tc>, window_params = [{transform_indices = @transform_0, window_bounds = array<i64: 2, 3>}, {transform_indices = @transform_1, window_bounds = array<i64: 1, 4, 128>}, {pipeline_mode = #tpu.pipeline_mode<synchronous>, transform_indices = @transform_2, window_bounds = array<i64: 4, 4>}, {pipeline_mode = #tpu.pipeline_mode<synchronous>, transform_indices = @transform_3, window_bounds = array<i64: 4, 1>}, {transform_indices = @transform_4, window_bounds = array<i64: 1, 4, 128>}]} {
    %0 = arith.index_cast %arg0 : i32 to index
    %c0 = arith.constant 0 : index
    %1 = memref.load %arg2[%0, %c0] : memref<2x3xf32, #tpu.memory_space<smem>>
    %2 = arith.index_cast %arg0 : i32 to index
    %c1 = arith.constant 1 : index
    %3 = memref.load %arg2[%2, %c1] : memref<2x3xf32, #tpu.memory_space<smem>>
    %4 = arith.index_cast %arg0 : i32 to index
    %c2 = arith.constant 2 : index
    %5 = memref.load %arg2[%4, %c2] : memref<2x3xf32, #tpu.memory_space<smem>>
    %c0_0 = arith.constant 0 : index
    %c0_1 = arith.constant 0 : index
    %c0_2 = arith.constant 0 : index
    %6 = vector.load %arg3[%c0_0, %c0_1, %c0_2] : memref<1x4x128xf32, #tpu.memory_space<vmem>>, vector<1x4x128xf32>
    %7 = vector.shape_cast %6 : vector<1x4x128xf32> to vector<4x128xf32>
    %c0_3 = arith.constant 0 : index
    %c0_4 = arith.constant 0 : index
    %8 = vector.load %arg4[%c0_3, %c0_4] : memref<4x4xf32, #tpu.memory_space<vmem>>, vector<4x4xf32>
    %9 = vector.extract_strided_slice %8 {offsets = [0, 0], sizes = [4, 1], strides = [1, 1]} : vector<4x4xf32> to vector<4x1xf32>
    %10 = vector.extract_strided_slice %7 {offsets = [0, 0], sizes = [1, 128], strides = [1, 1]} : vector<4x128xf32> to vector<1x128xf32>
    %11 = vector.broadcast %9 : vector<4x1xf32> to vector<4x128xf32>
    %12 = vector.broadcast %10 : vector<1x128xf32> to vector<4x128xf32>
    %13 = arith.mulf %11, %12 : vector<4x128xf32>
    %14 = vector.extract_strided_slice %8 {offsets = [0, 1], sizes = [4, 1], strides = [1, 1]} : vector<4x4xf32> to vector<4x1xf32>
    %15 = vector.extract_strided_slice %7 {offsets = [1, 0], sizes = [1, 128], strides = [1, 1]} : vector<4x128xf32> to vector<1x128xf32>
    %16 = vector.broadcast %14 : vector<4x1xf32> to vector<4x128xf32>
    %17 = vector.broadcast %15 : vector<1x128xf32> to vector<4x128xf32>
    %18 = arith.mulf %16, %17 : vector<4x128xf32>
    %19 = arith.addf %13, %18 : vector<4x128xf32>
    %20 = vector.extract_strided_slice %8 {offsets = [0, 2], sizes = [4, 1], strides = [1, 1]} : vector<4x4xf32> to vector<4x1xf32>
    %21 = vector.extract_strided_slice %7 {offsets = [2, 0], sizes = [1, 128], strides = [1, 1]} : vector<4x128xf32> to vector<1x128xf32>
    %22 = vector.broadcast %20 : vector<4x1xf32> to vector<4x128xf32>
    %23 = vector.broadcast %21 : vector<1x128xf32> to vector<4x128xf32>
    %24 = arith.mulf %22, %23 : vector<4x128xf32>
    %25 = arith.addf %19, %24 : vector<4x128xf32>
    %26 = vector.extract_strided_slice %8 {offsets = [0, 3], sizes = [4, 1], strides = [1, 1]} : vector<4x4xf32> to vector<4x1xf32>
    %27 = vector.extract_strided_slice %7 {offsets = [3, 0], sizes = [1, 128], strides = [1, 1]} : vector<4x128xf32> to vector<1x128xf32>
    %28 = vector.broadcast %26 : vector<4x1xf32> to vector<4x128xf32>
    %29 = vector.broadcast %27 : vector<1x128xf32> to vector<4x128xf32>
    %30 = arith.mulf %28, %29 : vector<4x128xf32>
    %31 = arith.addf %25, %30 : vector<4x128xf32>
    %32 = vector.broadcast %1 : f32 to vector<4x128xf32>
    %33 = arith.mulf %31, %32 : vector<4x128xf32>
    %c0_5 = arith.constant 0 : index
    %c0_6 = arith.constant 0 : index
    %34 = vector.load %arg5[%c0_5, %c0_6] : memref<4x1xf32, #tpu.memory_space<vmem>>, vector<4x1xf32>
    %35 = vector.broadcast %3 : f32 to vector<4x1xf32>
    %36 = arith.mulf %34, %35 : vector<4x1xf32>
    %37 = vector.broadcast %36 : vector<4x1xf32> to vector<4x128xf32>
    %38 = arith.addf %33, %37 : vector<4x128xf32>
    %39 = vector.broadcast %5 : f32 to vector<4x128xf32>
    %40 = arith.mulf %7, %39 : vector<4x128xf32>
    %41 = arith.addf %38, %40 : vector<4x128xf32>
    %c0_7 = arith.constant 0 : index
    %c0_8 = arith.constant 0 : index
    %c0_9 = arith.constant 0 : index
    %42 = vector.load %arg6[%c0_7, %c0_8, %c0_9] : memref<1x4x128xf32, #tpu.memory_space<vmem>>, vector<1x4x128xf32>
    %43 = vector.shape_cast %42 : vector<1x4x128xf32> to vector<4x128xf32>
    %44 = vector.shape_cast %41 : vector<4x128xf32> to vector<1x4x128xf32>
    tpu.vector_store %arg6[%c0_7, %c0_8, %c0_9], %44 {strides = array<i32>} : memref<1x4x128xf32, #tpu.memory_space<vmem>>, vector<1x4x128xf32>,
    return
  }
  func.func @transform_0(%arg0: i32, %arg1: i32) -> (i32, i32) {
    %c0_i32 = arith.constant 0 : i32
    %c0_i32_0 = arith.constant 0 : i32
    %c0_i32_1 = arith.constant 0 : i32
    return %c0_i32, %c0_i32_0 : i32, i32
  }
  func.func @transform_1(%arg0: i32, %arg1: i32) -> (i32, i32, i32) {
    %c0_i32 = arith.constant 0 : i32
    %c0_i32_0 = arith.constant 0 : i32
    return %arg0, %c0_i32, %arg1 : i32, i32, i32
  }
  func.func @transform_2(%arg0: i32, %arg1: i32) -> (i32, i32) {
    %c0_i32 = arith.constant 0 : i32
    %c0_i32_0 = arith.constant 0 : i32
    %c0_i32_1 = arith.constant 0 : i32
    return %c0_i32, %c0_i32_0 : i32, i32
  }
  func.func @transform_3(%arg0: i32, %arg1: i32) -> (i32, i32) {
    %c0_i32 = arith.constant 0 : i32
    %c0_i32_0 = arith.constant 0 : i32
    %c0_i32_1 = arith.constant 0 : i32
    return %c0_i32, %c0_i32_0 : i32, i32
  }
  func.func @transform_4(%arg0: i32, %arg1: i32) -> (i32, i32, i32) {
    %c0_i32 = arith.constant 0 : i32
    %c0_i32_0 = arith.constant 0 : i32
    return %arg0, %c0_i32, %arg1 : i32, i32, i32
  }
}

</mosaic_0001>

<bundles_post_ra>
// kernel: tpu_custom_call.1
= control target key start
LH: loop header
LB: loop body
LE: loop exit
PB: predicated region body
PF: predicated region fallthrough
CT: control target
= control target key end

     0   :  { %s956_s0 = inlined_call_operand.vmem [shape: f32[2,3], index: 0, kind: input, shape index: {}]   ;;  %s957_s1 = inlined_call_operand.hbm [shape: f32[2,4,256], index: 1, kind: input, shape index: {}]   ;;  %s958_s2 = inlined_call_operand.vmem [shape: f32[4,4], index: 2, kind: input, shape index: {}]   ;;  %s959_s3 = inlined_call_operand.vmem [shape: f32[4,1], index: 3, kind: input, shape index: {}]   ;;  %s960_s4 = inlined_call_operand.hbm [shape: f32[2,4,256], index: 4, kind: output, shape index: {}]  }
   0x1   :  { %969 = sst [smem:[#allocation14_spill]] %s956_s0 }
   0x2   :  { %970 = sst [smem:[#allocation15_spill]] %s960_s4 }
   0x3   :  { %9 = vsyncpa [#allocation5], 0 }
   0x4   :  { %10 = vsyncpa [#allocation3], 0 }
   0x5   :  { %12 = vsyncpa [#allocation3 + $0x1], 0 }
   0x6   :  { %13 = vsyncpa [#allocation4], 0 }
   0x7   :  { %15 = vsyncpa [#allocation4 + $0x1], 0  ;;  %s719_s15 = smov 0   ;;  %s721_s16 = smov 0  }
   0x8   :  { %s723_s17 = smov 0   ;;  %s725_s18 = smov 0  }
   0x9   :  { %s727_s19 = smov 0   ;;  %s729_s20 = smov 0  }
   0xa   :  { %s731_s21 = smov 0   ;;  %s733_s22 = smov 0  }
   0xb LB: > { %971 = sst [smem:[#allocation11_spill]] %s657_s15  ;;  %s421_s23 = sadd.s32 4294967295, %s685_s22   ;;  %s685_s22 = sphi %s733_s22, %s21_s22   ;;  %s681_s21 = sphi %s731_s21, %s998_s21   ;;  %s677_s20 = sphi %s729_s20, %s997_s20   ;;  %s673_s19 = sphi %s727_s19, %s996_s19   ;;  %s669_s18 = sphi %s725_s18, %s995_s18   ;;  %s665_s17 = sphi %s723_s17, %s994_s17   ;;  %s661_s16 = sphi %s721_s16, %s993_s16   ;;  %s657_s15 = sphi %s719_s15, %s992_s15  }
   0xc   : > { %s422_s24 = sadd.s32 4294967294, %s685_s22   ;;  %p76_p0 = scmp.ne.s32.totalorder %s661_s16, %s657_s15 }
   0xd   : > { %p763_p1 = scmp.eq.s32.totalorder %s421_s23, 0  ;;  %p767_p2 = scmp.eq.s32.totalorder %s421_s23, 3 }
   0xe   : > { %p150_p3 = scmp.eq.s32.totalorder %s422_s24, 3  ;;  %p423_p5 = scmp.ge.s32.totalorder %s685_s22, 1 }
   0xf   : > { %s972_s25 = scalar_select %p763_p1, 1, 0 }
  0x10   : > { %s973_s26 = scalar_select %p767_p2, 1, 0 }
  0x11   : > { %p773_p4 = por %p763_p1, %p76_p0  ;;  %p778_p6 = por %p150_p3, %p76_p0 }
  0x12   : > { %p157_p7 = scmp.lt.s32.totalorder %s685_s22, 5  ;;  %s977_s0 = sld [smem:[#allocation14_spill]] }
  0x13   : > { %s974_s27 = scalar_select %p773_p4, 1, 0 }
  0x14   : > { %s975_s28 = scalar_select %p778_p6, 1, 0 }
  0x15   : > { %p786_p8 = pnand %p423_p5, %p157_p7  ;;  %s30_s7 = sadd.s32 1, %s677_s20 }
  0x16   : > { %976 = sst [smem:[#allocation12_spill]] %s975_s28 }
  0x17   : > { %p447_p9 = pneg %p786_p8 }
  0x18   : > { %s170_s5 = sshll.u32 %s977_s0, 4  ;;  %s171_s5 = int_to_ptr.vmem [resolvable:$true] %s170_s5 }
  0x19   : > { %p448_p10 = pnand %p447_p9, %p763_p1  ;;  %s538_s8 = scalar_lea.vmem %s171_s5, 32 }
  0x1a   : > { %p539_p11 = scmp.ne.s32.totalorder %s171_s5, %s538_s8  ;;  %p546_p3 = scmp.lt.s32.totalorder %s171_s5, %s171_s5 }
  0x1b   : > { %p540_p12 = pneg %p448_p10  ;;  %p547_p6 = scmp.lt.s32.totalorder %s538_s8, %s538_s8 }
  0x1d   : > { %p541_p13 = pnand %p540_p12, %p539_p11  ;;  %p548_p4 = por %p547_p6, %p546_p3 }
  0x1f   : > { %p542_p0 = pneg %p541_p13 }
  0x21   : > { %p549_p2 = pnand %p548_p4, %p542_p0 }
  0x23   : > { %552 = shalt.err (!%p549_p2)
}
  0x24   : > { %s687_s9 = smov [#allocation2]   ;;  %p31_p5 = scmp.ge.s32.totalorder %s30_s7, 2 }
  0x25   : > { %450 = dma.vmem_to_smem (!%p448_p10), %s171_s5, 32, %s687_s9, [#allocation5]  }
  0x26   : > { %s33_s10 = sadd.s32 1, %s681_s21  ;;  %s63_s11 = sadd.s32 1, %s665_s17 }
  0x27   : > { %p70_p6 = scmp.ne.s32.totalorder %s665_s17, %s661_s16  ;;  %s1000_s7 = smov (%p31_p5, %s30_s7), 0 }
  0x28   : > { %979 = sst [smem:[#allocation13_spill]] %s1000_s7  ;;  %s1002_s10 = smov (!%p31_p5, %s33_s10), %s681_s21 }
  0x29   : > { %s59_s12 = ssub.s32 %s677_s20, %s1000_s7  ;;  %p71_p2 = scmp.eq.s32.totalorder %s685_s22, 0 }
  0x2a   : > { %p35_p4 = scmp.ge.s32.totalorder %s1002_s10, 2  ;;  %p980_p7 = scmp.ne.s32.totalorder %s973_s26, 0 }
  0x2b   : > { %p811_p10 = por %p71_p2, %p70_p6  ;;  %p460_p11 = scmp.lt.s32.totalorder %s685_s22, 4 }
  0x2c   : > { %p807_p9 = por %p980_p7, %p70_p6  ;;  %s1004_s10 = smov (%p35_p4, %s1002_s10), 0 }
  0x2d   : > { %s187_s23 = sand.u32 1, %s665_s17   ;;  %s427_s24 = sshll.u32 %s681_s21, 1 }
  0x2e   : > { %s981_s13 = scalar_select %p807_p9, 1, 0 }
  0x2f   : > { %s58_s29 = ssub.s32 %s681_s21, %s1004_s10  ;;  %s426_s5 = sshll.u32 %s187_s23, 2 }
  0x30   : > { %s60_s30 = sor.u32 %s59_s12, %s58_s29  ;;  %s196_s26 = sadd.s32 %s677_s20, %s427_s24 }
  0x31   : > { %p61_p12 = scmp.eq.s32.totalorder %s60_s30, 0  ;;  %s191_s8 = scalar_lea.vmem [#allocation6], %s426_s5 }
  0x32   : > { %s200_s9 = sshll.u32 %s191_s8, 4  ;;  %s428_s7 = sshll.u32 %s196_s26, 6  ;;  %s826_s9 = int_to_ptr.vmem [resolvable:$true] %s200_s9 }
  0x33   : > { %s824_s0 = scalar_select %p61_p12, %s665_s17, %s63_s11  }
  0x34   : > { %s831_s4 = scalar_lea.hbm %s957_s1, %s428_s7  ;;  %p837_p13 = pnand %p460_p11, %p811_p10 }
  0x35   : > { %s188_s11 = scalar_lea.sflag [#allocation3], %s187_s23  ;;  %s553_s24 = scalar_lea.hbm %s831_s4, 64 }
  0x36   : > { %p554_p0 = scmp.ne.s32.totalorder %s831_s4, %s553_s24  ;;  %p555_p3 = pneg %p837_p13 }
  0x37   : > { %s558_s7 = scalar_lea.hbm %s957_s1, 256  ;;  %p559_p2 = scmp.lt.u32.totalorder %s831_s4, %s957_s1 }
  0x38   : > { %p556_p5 = pnand %p555_p3, %p554_p0  ;;  %p560_p4 = scmp.lt.u32.totalorder %s558_s7, %s553_s24 }
  0x39   : > { %p562_p10 = scmp.lt.u32.totalorder %s553_s24, %s831_s4 }
  0x3a   : > { %p557_p6 = pneg %p556_p5  ;;  %p561_p7 = por %p560_p4, %p559_p2 }
  0x3c   : > { %p563_p11 = por %p562_p10, %p561_p7 }
  0x3e   : > { %p564_p12 = pnand %p563_p11, %p557_p6 }
  0x40   : > { %567 = shalt.err (!%p564_p12)
}
  0x41   : > { %s568_s23 = scalar_lea.vmem %s826_s9, 64  ;;  %s688_s30 = smov [#allocation6]  }
  0x42   : > { %p569_p0 = scmp.ne.s32.totalorder %s826_s9, %s568_s23  ;;  %s573_s5 = sshll.u32 %s688_s30, 4  ;;  %s574_s5 = int_to_ptr.vmem [resolvable:$false] %s573_s5 }
  0x43   : > { %s575_s26 = scalar_lea.vmem %s574_s5, 128  ;;  %p576_p1 = scmp.lt.s32.totalorder %s826_s9, %s574_s5 }
  0x44   : > { %p571_p5 = pnand %p569_p0, %p555_p3  ;;  %p577_p2 = scmp.lt.s32.totalorder %s575_s26, %s568_s23 }
  0x46   : > { %p572_p9 = pneg %p571_p5  ;;  %p578_p4 = por %p577_p2, %p576_p1 }
  0x48   : > { %p579_p7 = pnand %p578_p4, %p572_p9 }
  0x4a   : > { %582 = shalt.err (!%p579_p7)
}
  0x4b   : > { %454 = dma.hbm_to_vmem [thread:$0]  (!%p837_p13), %s831_s4, 64, %s826_s9, %s188_s11  }
  0x4c   : > { %209 = sbr.rel (%p786_p8) target bundleno = 253 (0xfd), region = 36  ;;  %p984_p3 = scmp.ne.s32.totalorder (!%p786_p8), %s972_s25, 0 }
  0x53   : > { %644 = dma.done.wait (%p984_p3), [#allocation5], 32  }
  0x54   : > { %646 = vsyncadd (%p984_p3), [#allocation5], 4294967264  ;;  %s873_s8 = sand.u32 1, %s661_s16   ;;  %p985_p1 = scmp.ne.s32.totalorder %s974_s27, 0 }
  0x55   : > { %s431_s12 = sshll.u32 %s873_s8, 2  ;;  %s216_s24 = scalar_lea.sflag [#allocation3], %s873_s8 }
  0x56   : > { %s219_s4 = scalar_lea.vmem [#allocation6], %s431_s12 }
  0x57   : > { %648 = dma.done.wait (%p985_p1), %s216_s24, 64  }
  0x58   : > { %650 = vsyncadd (%p985_p1), %s216_s24, 4294967232 }
  0x59   : > { %224 = sfence }
  0x5a   : > { %v252_v0 = vld [vmem:[%s958_s2] sm:$0xf]  ;;  %v689_v1 = vmov 0   ;;  %v690_v2 = vmov 2   ;;  %s887_s9 = sshll.u32 %s673_s19, 7  ;;  %v691_v3 = vmov 1   ;;  %v258_v8 = vlaneseq }
  0x5b   : > { %532 = vset.pattern.permute.xlu0 %v689_v1  ;;  %534 = vset.pattern.permute.xlu1 %v690_v2  ;;  %s247_s11 = sadd.s32 1, %s887_s9  ;;  %v692_v4 = vmov 3   ;;  %v295_v5 = vld [vmem:[%s959_s3] sm:$0xf]  ;;  %s249_s7 = sadd.s32 2, %s887_s9 }
  0x5c   : > { %255 = vperm.xlu0 %532, %v252_v0   ;;  %274 = vperm.xlu1 %534, %v252_v0   ;;  %s248_s15 = sld [smem:[#allocation2 + %s247_s11]]  ;;  %v259_v9 = vshrl.u32 %v258_v8, 7  ;;  %v251_v12 = vld [vmem:[%s219_s4] sm:$0xf]  ;;  %s435_s23 = sshll.u32 %s673_s19, 1 }
  0x5d   : > { %s250_s14 = sld [smem:[#allocation2 + %s249_s7]]  ;;  %s320_s30 = sadd.s32 %s669_s18, %s435_s23 }
  0x5e   : > { %v260_v10 = vsub.s32 0, %v259_v9  ;;  %v269_v11 = vsub.s32 1, %v259_v9  ;;  %v279_v14 = vsub.s32 2, %v259_v9  ;;  %v289_v16 = vsub.s32 3, %v259_v9  ;;  %s246_s29 = sld [smem:[#allocation2 + %s887_s9]]  ;;  %s436_s5 = sshll.u32 %s320_s30, 6 }
  0x5f   : > { %s244_s26 = scalar_lea.vmem [#allocation7], %s431_s12  ;;  %s986_s25 = sld [smem:[#allocation15_spill]] }
  0x60   : > { %533 = vset.pattern.permute.xlu0 %v691_v3  ;;  %535 = vset.pattern.permute.xlu1 %v692_v4  ;;  %v261_v17 = vrot.slane %v251_v12, %v260_v10  ;;  %v270_v18 = vrot.slane %v251_v12, %v269_v11  ;;  %v280_v19 = vrot.slane %v251_v12, %v279_v14  ;;  %s324_s24 = sshll.u32 %s244_s26, 4  ;;  %s309_s18 = scalar_lea.sflag [#allocation4], %s873_s8  ;;  %s904_s24 = int_to_ptr.vmem [resolvable:$true] %s324_s24 }
  0x61   : > { %264 = vperm.xlu0 %533, %v252_v0   ;;  %284 = vperm.xlu1 %535, %v252_v0   ;;  %v290_v20 = vrot.slane %v251_v12, %v289_v16  ;;  %s583_s9 = scalar_lea.vmem %s904_s24, 64  ;;  %p987_p9 = scmp.ne.s32.totalorder %s981_s13, 0 }
  0x62   : > { %v296_v6 = vstv %s248_s15  ;;  %p584_p8 = scmp.ne.s32.totalorder %s904_s24, %s583_s9  ;;  %s693_s12 = smov [#allocation7]  }
  0x63   : > { %v297_v7 = vmul.f32 %v296_v6, %v295_v5  ;;  %v304_v29 = vstv %s250_s14  ;;  %s587_s11 = sshll.u32 %s693_s12, 4  ;;  %s588_s11 = int_to_ptr.vmem [resolvable:$false] %s587_s11 }
  0x64   : > { %v293_v30 = vstv %s246_s29  ;;  %v305_v33 = vmul.f32 %v304_v29, %v251_v12  ;;  %p585_p13 = pnand %p584_p8, %p987_p9  ;;  %s589_s15 = scalar_lea.vmem %s588_s11, 128 }
  0x65   : > { %536 = vset.pattern.permute.xlu1 %v689_v1  ;;  %537 = vset.pattern.permute.xlu0 %v689_v1  ;;  %s902_s19 = scalar_lea.hbm %s986_s25, %s436_s5  ;;  %p590_p10 = scmp.lt.s32.totalorder %s904_s24, %s588_s11 }
  0x66   : > { %300 = vperm.xlu1 %536, %v297_v7   ;;  %p586_p6 = pneg %p585_p13  ;;  %p591_p11 = scmp.lt.s32.totalorder %s589_s15, %s583_s9 }
  0x68   : > { %p592_p12 = por %p591_p11, %p590_p10 }
  0x6a   : > { %p593_p0 = pnand %p592_p12, %p586_p6 }
  0xdb   : > { %v256_v13 = vpop.permute.xlu0 %255  ;;  %v275_v15 = vpop.permute.xlu1 %274 }
  0xdc   : > { %v262_v23 = vmul.f32 %v261_v17, %v256_v13  ;;  %v281_v25 = vmul.f32 %v280_v19, %v275_v15 }
  0xe0   : > { %v265_v21 = vpop.permute.xlu0 %264  ;;  %v285_v22 = vpop.permute.xlu1 %284 }
  0xe1   : > { %v271_v24 = vmul.f32 %v270_v18, %v265_v21  ;;  %v291_v27 = vmul.f32 %v290_v20, %v285_v22 }
  0xe3   : > { %v272_v26 = vadd.f32 %v271_v24, %v262_v23 }
  0xe5   : > { %v282_v28 = vadd.f32 %v281_v25, %v272_v26  ;;  %v301_v32 = vpop.permute.xlu1 %300 }
  0xe7   : > { %v292_v31 = vadd.f32 %v291_v27, %v282_v28 }
  0xe9   : > { %v294_v34 = vmul.f32 %v293_v30, %v292_v31 }
  0xeb   : > { %v303_v35 = vadd.f32 %v301_v32, %v294_v34 }
  0xed   : > { %v306_v36 = vadd.f32 %v305_v33, %v303_v35 }
  0xef   : > { %307 = vst [vmem:[%s244_s26] sm:$0xf] %v306_v36 }
  0xf0   : > { %596 = shalt.err (!%p593_p0)
}
  0xf1   : > { %s597_s8 = scalar_lea.hbm %s902_s19, 64  ;;  %s601_s7 = scalar_lea.hbm %s986_s25, 256 }
  0xf2   : > { %p598_p5 = scmp.ne.s32.totalorder %s902_s19, %s597_s8  ;;  %p602_p7 = scmp.lt.u32.totalorder %s902_s19, %s986_s25 }
  0xf3   : > { %p603_p3 = scmp.lt.u32.totalorder %s601_s7, %s597_s8  ;;  %p605_p8 = scmp.lt.u32.totalorder %s597_s8, %s902_s19 }
  0xf4   : > { %p599_p2 = pnand %p598_p5, %p987_p9 }
  0xf5   : > { %p604_p1 = por %p603_p3, %p602_p7 }
  0xf6   : > { %p600_p4 = pneg %p599_p2 }
  0xf7   : > { %p606_p13 = por %p605_p8, %p604_p1 }
  0xf9   : > { %p607_p6 = pnand %p606_p13, %p600_p4 }
  0xfb   : > { %610 = shalt.err (!%p607_p6)
}
  0xfc   : > { %445 = dma.vmem_to_hbm [thread:$0]  (%p987_p9), %s904_s24, 64, %s902_s19, %s309_s18  }
  0xfd PF: > { %s988_s23 = sld [smem:[#allocation11_spill]]  ;;  %s989_s30 = sld [smem:[#allocation12_spill]] }
  0xfe   : > { %p462_p10 = scmp.ge.s32.totalorder %s685_s22, 2 }
 0x103   : > { %s336_s5 = sand.u32 1, %s988_s23   ;;  %p990_p11 = scmp.ne.s32.totalorder %s989_s30, 0 }
 0x104   : > { %s337_s26 = scalar_lea.sflag [#allocation4], %s336_s5 }
 0x105   : > { %p456_p12 = pnand %p462_p10, %p990_p11 }
 0x107   : > { %652 = dma.done.wait (!%p456_p12), %s337_s26, 64  }
 0x108   : > { %654 = vsyncadd (!%p456_p12), %s337_s26, 4294967232  ;;  %s21_s22 = sadd.s32 1, %s685_s22   ;;  %s991_s13 = sld [smem:[#allocation13_spill]] }
 0x109   : > { %p18_p0 = scmp.ge.s32.totalorder %s21_s22, 6   ;;  %s992_s15 = smov %s661_s16 }
 0x10a   : > { %s993_s16 = smov %s665_s17  ;;  %s994_s17 = smov %s824_s0 }
 0x10b   : > { %s995_s18 = smov %s677_s20  ;;  %s996_s19 = smov %s681_s21 }
 0x10c   : > { %s998_s21 = smov %s1004_s10  ;;  %20 = sbr.rel (!%p18_p0) target bundleno = 11 (0xb), region = 86 }
 0x10e   : > { %s997_s20 = smov %s991_s13 }
 0x113   :  { %342 = vsyncpa [#allocation3], 1 }
 0x114   :  { %344 = vsyncpa [#allocation3 + $0x1], 1 }
 0x115   :  { %345 = vsyncpa [#allocation4], 1 }
 0x116   :  { %347 = vsyncpa [#allocation4 + $0x1], 1 }
 0x117   :  { %348 = vsyncpa [#allocation5], 1 }
 0x118   :  { %350 = vsyncpa [#allocation5 + $0x1], 1 }

</bundles_post_ra>
